<compile_context>
chip_gen: v7x
topology: tpu7x:2x2x1
jax: 0.10.0
libtpu: 0.0.40
codegen_flags: <defaults>
</compile_context>

<pallas_src>
import functools

import jax
import jax.numpy as jnp
import numpy as np
from jax.experimental import pallas as pl
from jax.experimental.pallas import tpu as pltpu


def _round_up(x, m):
    return ((x + m - 1) // m) * m


def _cdiv(a, b):
    return -(-a // b)


def _default_bf16_act():
    """True iff the local TPU generation has a bf16 VPU/EUP path (v6e, v7x)."""
    try:
        kind = jax.devices()[0].device_kind.lower()
    except Exception:  # pragma: no cover - no accelerator visible
        return False
    return any(tag in kind for tag in ("v6", "v7", "7x"))


def _orthogonal(key, shape, gain):
    """Deterministic orthogonal init matching torch.nn.init.orthogonal_ semantics."""
    rows, cols = shape
    flat = jax.random.normal(key, (max(rows, cols), min(rows, cols)), dtype=jnp.float32)
    q, r = jnp.linalg.qr(flat)
    q = q * jnp.sign(jnp.diag(r))[None, :]  # sign fix (same as PyTorch)
    if rows < cols:
        q = q.T
    return gain * q[:rows, :cols]


def critic_kernel(xt_ref, w1_ref, b1_ref, w2_ref, b2_ref, w3_ref, b3_ref, o_ref,
                  *, lane_chunk, act_dtype, mxu_precision):
    """One batch tile. xt_ref: (D_in, TB) with batch on the lane axis.

    Weights are PyTorch (out, in) layout; biases are (out, 1) f32 columns; w3 is a
    (fc2, 1) column.  Output block is a lane-dense (1, 1, TB) row of f32 values.
    The tile is processed in lane_chunk-wide slices so intermediates stay in vregs.
    """
    tb = xt_ref.shape[1]
    n_chunks = tb // lane_chunk

    # Hoist all resident operands out of the chunk loop (loaded once per grid step).
    w1 = w1_ref[...]                                   # (fc1, D_in)
    w2 = w2_ref[...]                                   # (fc2, fc1)
    b1 = b1_ref[...]                                   # (fc1, 1) f32
    b2 = b2_ref[...]                                   # (fc2, 1) f32
    w3 = w3_ref[...].astype(jnp.float32)               # (fc2, 1)
    b3 = b3_ref[...].astype(jnp.float32)               # (1, 1)

    def chunk(c, carry):
        start = pl.multiple_of(c * lane_chunk, lane_chunk)
        xt = xt_ref[:, pl.ds(start, lane_chunk)]       # (D_in, LC), dtype == w1.dtype
        z1 = jnp.dot(w1, xt, preferred_element_type=jnp.float32,
                     precision=mxu_precision) + b1     # (fc1, LC) f32
        h1 = jnp.tanh(z1.astype(act_dtype))            # bf16 tanh on v6e/v7x, f32 on v5e
        z2 = jnp.dot(w2, h1.astype(w2.dtype), preferred_element_type=jnp.float32,
                     precision=mxu_precision) + b2     # (fc2, LC) f32
        h2 = jnp.tanh(z2.astype(act_dtype))
        # Value head: VPU multiply + sublane (XLU) reduction in f32 instead of an
        # N=1 MXU matmul.
        v = jnp.sum(h2.astype(jnp.float32) * w3, axis=0, keepdims=True) + b3  # (1, LC)
        o_ref[:, :, pl.ds(start, lane_chunk)] = v.reshape(1, 1, lane_chunk)
        return carry

    jax.lax.fori_loop(0, n_chunks, chunk, 0, unroll=True)


@functools.partial(jax.jit, static_argnames=("block_batch", "use_bf16_act"))
def critic_forward(x, w1, b1, w2, b2, w3, b3, *, block_batch=4096, use_bf16_act=None):
    """Critic forward: x (batch, input_dims) float32 -> state value (batch, 1) float32."""
    if use_bf16_act is None:
        use_bf16_act = _default_bf16_act()
    act_dtype = jnp.bfloat16 if use_bf16_act else jnp.float32
    # MXU has huge slack (EUP-bound kernel) -> exact f32 passes are free for f32 weights.
    mxu_precision = jax.lax.Precision.HIGHEST if w1.dtype == jnp.float32 else None

    batch, d_in = x.shape
    # Cap the tile at ceil(batch/2) so the "parallel" grid axis has >= 2 steps when the
    # batch allows it (both v7x TensorCores get work); tiles stay multiples of 128.
    tb = min(_round_up(block_batch, 128), max(128, _round_up(_cdiv(batch, 2), 128)))
    padded = _round_up(batch, tb)
    grid = (padded // tb,)

    # Largest 128-multiple lane chunk that divides the tile; bounds the vreg working set.
    lane_chunk = next(c for c in (512, 256, 128) if tb % c == 0)

    # Put batch on the lane axis, pad to a multiple of the tile size, and fold the bf16
    # cast (when weights are bf16) into this single relayout pass.
    xt = jnp.pad(x.T.astype(w1.dtype), ((0, 0), (0, padded - batch)))

    kernel = functools.partial(critic_kernel, lane_chunk=lane_chunk,
                               act_dtype=act_dtype, mxu_precision=mxu_precision)

    def resident(a):  # whole array, same block every grid step -> stays in VMEM
        return pl.BlockSpec(a.shape, lambda i: (0, 0))

    out = pl.pallas_call(
        kernel,
        grid=grid,
        out_shape=jax.ShapeDtypeStruct((grid[0], 1, tb), jnp.float32),
        in_specs=[
            pl.BlockSpec((d_in, tb), lambda i: (0, i)),   # streamed x tile
            resident(w1), resident(b1),
            resident(w2), resident(b2),
            resident(w3), resident(b3),
        ],
        out_specs=pl.BlockSpec((1, 1, tb), lambda i: (i, 0, 0)),
        compiler_params=pltpu.CompilerParams(
            dimension_semantics=("parallel",),        # v7x: shard batch tiles over 2 TCs
            vmem_limit_bytes=32 * 1024 * 1024,
        ),
    )(xt, w1, b1, w2, b2, w3, b3)

    return out.reshape(padded)[:batch].reshape(batch, 1)


def make_critic_params(key, input_dims, fc1_dims, fc2_dims, dtype=jnp.float32):
    """Parameters as in Critic.__init__: orthogonal(std=sqrt(2)) weights, zero biases.

    Weights stay in PyTorch (out, in) layout; the value-head weight is stored as a
    (fc2, 1) column and biases as (out, 1) f32 columns so they broadcast over the lane
    (batch) axis.  Pass dtype=jnp.bfloat16 for the bf16 MXU path on v6e/v7x.
    """
    k1, k2, k3 = jax.random.split(key, 3)
    gain = float(np.sqrt(2.0))
    w1 = _orthogonal(k1, (fc1_dims, input_dims), gain).astype(dtype)   # (fc1, in)
    w2 = _orthogonal(k2, (fc2_dims, fc1_dims), gain).astype(dtype)     # (fc2, fc1)
    w3 = _orthogonal(k3, (1, fc2_dims), gain).T.astype(dtype)          # (fc2, 1)
    b1 = jnp.zeros((fc1_dims, 1), jnp.float32)
    b2 = jnp.zeros((fc2_dims, 1), jnp.float32)
    b3 = jnp.zeros((1, 1), jnp.float32)
    return w1, b1, w2, b2, w3, b3


def reference_forward(x, w1, b1, w2, b2, w3, b3):
    """Pure-JAX f32 reference matching the PyTorch Critic.forward (true f32 matmuls)."""
    f32 = lambda a: a.astype(jnp.float32)
    hp = jax.lax.Precision.HIGHEST
    h1 = jnp.tanh(jnp.dot(x, f32(w1).T, precision=hp) + f32(b1).T)
    h2 = jnp.tanh(jnp.dot(h1, f32(w2).T, precision=hp) + f32(b2).T)
    return jnp.dot(h2, f32(w3), precision=hp) + f32(b3)


if __name__ == "__main__":
    input_dims = 16
    fc1_dims = 64
    fc2_dims = 64

    key = jax.random.PRNGKey(0)
    kx, kp, kx2 = jax.random.split(key, 3)

    # --- small batch, f32 weights, forced f32 tanh: bit-fidelity check vs f32 reference
    batch = 8
    x = jax.random.normal(kx, (batch, input_dims), dtype=jnp.float32)
    params = make_critic_params(kp, input_dims, fc1_dims, fc2_dims)
    out = critic_forward(x, *params, use_bf16_act=False)
    jax.block_until_ready(out)
    assert out.shape == (batch, 1), out.shape
    ref = reference_forward(x, *params)
    np.testing.assert_allclose(np.asarray(out), np.asarray(ref), rtol=1e-5, atol=1e-5)

    # --- same inputs, generation-default activations (bf16 tanh on v6e/v7x, f32 on v5e)
    out_auto = critic_forward(x, *params)
    jax.block_until_ready(out_auto)
    np.testing.assert_allclose(np.asarray(out_auto), np.asarray(ref), rtol=5e-2, atol=5e-2)

    # --- bf16 weights (v6e/v7x MXU + EUP fast path); f32 accumulation inside the kernel
    params_bf16 = make_critic_params(kp, input_dims, fc1_dims, fc2_dims, dtype=jnp.bfloat16)
    out_bf16 = critic_forward(x, *params_bf16)
    jax.block_until_ready(out_bf16)
    ref_bf16 = reference_forward(x, *params_bf16)
    np.testing.assert_allclose(np.asarray(out_bf16), np.asarray(ref_bf16),
                               rtol=5e-2, atol=5e-2)

    # --- moderate batch: exercises the multi-tile grid and the in-kernel lane-chunk loop
    batch2 = 1536
    x2 = jax.random.normal(kx2, (batch2, input_dims), dtype=jnp.float32)
    out2 = critic_forward(x2, *params, block_batch=1024, use_bf16_act=False)
    jax.block_until_ready(out2)
    ref2 = reference_forward(x2, *params)
    np.testing.assert_allclose(np.asarray(out2), np.asarray(ref2), rtol=1e-5, atol=1e-5)

    # TODO(synk): int8 weight quantization intentionally not offered (v7x MXU has no int path).
    print("KERNEL_OK")
</pallas_src>

<mosaic_0001>
module attributes {stable_mosaic.version = 11 : i64} {
  func.func @critic_kernel(%arg0: i32, %arg1: memref<16x128xf32, #tpu.memory_space<vmem>>, %arg2: memref<64x16xf32, #tpu.memory_space<vmem>>, %arg3: memref<64x1xf32, #tpu.memory_space<vmem>>, %arg4: memref<64x64xf32, #tpu.memory_space<vmem>>, %arg5: memref<64x1xf32, #tpu.memory_space<vmem>>, %arg6: memref<64x1xf32, #tpu.memory_space<vmem>>, %arg7: memref<1x1xf32, #tpu.memory_space<vmem>>, %arg8: memref<1x1x128xf32, #tpu.memory_space<vmem>>) attributes {dimension_semantics = [#tpu.dimension_semantics<parallel>], iteration_bounds = array<i64: 1>, scalar_prefetch = 0 : i64, scratch_operands = 0 : i64, tpu.core_type = #tpu.core_type<tc>, window_params = [{transform_indices = @transform_0, window_bounds = array<i64: 16, 128>}, {pipeline_mode = #tpu.pipeline_mode<synchronous>, transform_indices = @transform_1, window_bounds = array<i64: 64, 16>}, {pipeline_mode = #tpu.pipeline_mode<synchronous>, transform_indices = @transform_2, window_bounds = array<i64: 64, 1>}, {pipeline_mode = #tpu.pipeline_mode<synchronous>, transform_indices = @transform_3, window_bounds = array<i64: 64, 64>}, {pipeline_mode = #tpu.pipeline_mode<synchronous>, transform_indices = @transform_4, window_bounds = array<i64: 64, 1>}, {pipeline_mode = #tpu.pipeline_mode<synchronous>, transform_indices = @transform_5, window_bounds = array<i64: 64, 1>}, {pipeline_mode = #tpu.pipeline_mode<synchronous>, transform_indices = @transform_6, window_bounds = array<i64: 1, 1>}, {transform_indices = @transform_7, window_bounds = array<i64: 1, 1, 128>}]} {
    %c0 = arith.constant 0 : index
    %c0_0 = arith.constant 0 : index
    %0 = vector.load %arg2[%c0, %c0_0] : memref<64x16xf32, #tpu.memory_space<vmem>>, vector<64x16xf32>
    %c0_1 = arith.constant 0 : index
    %c0_2 = arith.constant 0 : index
    %1 = vector.load %arg4[%c0_1, %c0_2] : memref<64x64xf32, #tpu.memory_space<vmem>>, vector<64x64xf32>
    %c0_3 = arith.constant 0 : index
    %c0_4 = arith.constant 0 : index
    %2 = vector.load %arg3[%c0_3, %c0_4] : memref<64x1xf32, #tpu.memory_space<vmem>>, vector<64x1xf32>
    %c0_5 = arith.constant 0 : index
    %c0_6 = arith.constant 0 : index
    %3 = vector.load %arg5[%c0_5, %c0_6] : memref<64x1xf32, #tpu.memory_space<vmem>>, vector<64x1xf32>
    %c0_7 = arith.constant 0 : index
    %c0_8 = arith.constant 0 : index
    %4 = vector.load %arg6[%c0_7, %c0_8] : memref<64x1xf32, #tpu.memory_space<vmem>>, vector<64x1xf32>
    %c0_9 = arith.constant 0 : index
    %c0_10 = arith.constant 0 : index
    %5 = vector.load %arg7[%c0_9, %c0_10] : memref<1x1xf32, #tpu.memory_space<vmem>>, vector<1x1xf32>
    %c0_i32 = arith.constant 0 : i32
    %c128_i32 = arith.constant 128 : i32
    %6 = arith.muli %c0_i32, %c128_i32 : i32
    %7 = tpu.assume_multiple %6, 128 : i32
    %c0_11 = arith.constant 0 : index
    %8 = arith.index_cast %7 : i32 to index
    %9 = vector.load %arg1[%c0_11, %8] : memref<16x128xf32, #tpu.memory_space<vmem>>, vector<16x128xf32>
    %cst = arith.constant dense<0.000000e+00> : vector<64x128xf32>
    %10 = tpu.matmul %0, %9, %cst {dimension_numbers = #tpu.dot_dimension_numbers<[1], [0], [0], [1], [0, 0, 1, 1], [], []>, precision = #tpu.contract_precision<fp32>} : vector<64x16xf32>, vector<16x128xf32>, vector<64x128xf32> -> vector<64x128xf32>
    %11 = vector.broadcast %2 : vector<64x1xf32> to vector<64x128xf32>
    %12 = arith.addf %10, %11 : vector<64x128xf32>
    %13 = math.tanh %12 : vector<64x128xf32>
    %cst_12 = arith.constant dense<0.000000e+00> : vector<64x128xf32>
    %14 = tpu.matmul %1, %13, %cst_12 {dimension_numbers = #tpu.dot_dimension_numbers<[1], [0], [0], [1], [0, 0, 1, 1], [], []>, precision = #tpu.contract_precision<fp32>} : vector<64x64xf32>, vector<64x128xf32>, vector<64x128xf32> -> vector<64x128xf32>
    %15 = vector.broadcast %3 : vector<64x1xf32> to vector<64x128xf32>
    %16 = arith.addf %14, %15 : vector<64x128xf32>
    %17 = math.tanh %16 : vector<64x128xf32>
    %18 = vector.broadcast %4 : vector<64x1xf32> to vector<64x128xf32>
    %19 = arith.mulf %17, %18 : vector<64x128xf32>
    %cst_13 = arith.constant dense<0.000000e+00> : vector<128xf32>
    %20 = vector.multi_reduction <add>, %19, %cst_13 [0] : vector<64x128xf32> to vector<128xf32>
    %21 = vector.shape_cast %20 : vector<128xf32> to vector<1x128xf32>
    %22 = vector.broadcast %5 : vector<1x1xf32> to vector<1x128xf32>
    %23 = arith.addf %21, %22 : vector<1x128xf32>
    %24 = vector.shape_cast %23 : vector<1x128xf32> to vector<1x1x128xf32>
    %c0_14 = arith.constant 0 : index
    %c0_15 = arith.constant 0 : index
    %25 = arith.index_cast %7 : i32 to index
    %26 = vector.load %arg8[%c0_14, %c0_15, %25] : memref<1x1x128xf32, #tpu.memory_space<vmem>>, vector<1x1x128xf32>
    tpu.vector_store %arg8[%c0_14, %c0_15, %25], %24 {strides = array<i32>} : memref<1x1x128xf32, #tpu.memory_space<vmem>>, vector<1x1x128xf32>,
    %c1_i32 = arith.constant 1 : i32
    return
  }
  func.func @transform_0(%arg0: i32) -> (i32, i32) {
    %c0_i32 = arith.constant 0 : i32
    %c0_i32_0 = arith.constant 0 : i32
    return %c0_i32, %arg0 : i32, i32
  }
  func.func @transform_1(%arg0: i32) -> (i32, i32) {
    %c0_i32 = arith.constant 0 : i32
    %c0_i32_0 = arith.constant 0 : i32
    %c0_i32_1 = arith.constant 0 : i32
    return %c0_i32, %c0_i32_0 : i32, i32
  }
  func.func @transform_2(%arg0: i32) -> (i32, i32) {
    %c0_i32 = arith.constant 0 : i32
    %c0_i32_0 = arith.constant 0 : i32
    %c0_i32_1 = arith.constant 0 : i32
    return %c0_i32, %c0_i32_0 : i32, i32
  }
  func.func @transform_3(%arg0: i32) -> (i32, i32) {
    %c0_i32 = arith.constant 0 : i32
    %c0_i32_0 = arith.constant 0 : i32
    %c0_i32_1 = arith.constant 0 : i32
    return %c0_i32, %c0_i32_0 : i32, i32
  }
  func.func @transform_4(%arg0: i32) -> (i32, i32) {
    %c0_i32 = arith.constant 0 : i32
    %c0_i32_0 = arith.constant 0 : i32
    %c0_i32_1 = arith.constant 0 : i32
    return %c0_i32, %c0_i32_0 : i32, i32
  }
  func.func @transform_5(%arg0: i32) -> (i32, i32) {
    %c0_i32 = arith.constant 0 : i32
    %c0_i32_0 = arith.constant 0 : i32
    %c0_i32_1 = arith.constant 0 : i32
    return %c0_i32, %c0_i32_0 : i32, i32
  }
  func.func @transform_6(%arg0: i32) -> (i32, i32) {
    %c0_i32 = arith.constant 0 : i32
    %c0_i32_0 = arith.constant 0 : i32
    %c0_i32_1 = arith.constant 0 : i32
    return %c0_i32, %c0_i32_0 : i32, i32
  }
  func.func @transform_7(%arg0: i32) -> (i32, i32, i32) {
    %c0_i32 = arith.constant 0 : i32
    %c0_i32_0 = arith.constant 0 : i32
    %c0_i32_1 = arith.constant 0 : i32
    return %arg0, %c0_i32, %c0_i32_0 : i32, i32, i32
  }
}

</mosaic_0001>

<bundles_post_ra>
// kernel: critic_forward.1
= control target key start
LH: loop header
LB: loop body
LE: loop exit
PB: predicated region body
PF: predicated region fallthrough
CT: control target
= control target key end

     0   :  { %vm111_vm0 = vcmask 130048   ;;  %v2570_v3 = vmov 0   ;;  %vm944_vm1 = vcmask 523264   ;;  %s3120_s0 = inlined_call_operand.vmem [shape: f32[16,128], index: 0, kind: input, shape index: {}]   ;;  %s3121_s1 = inlined_call_operand.vmem [shape: f32[64,16], index: 1, kind: input, shape index: {}]   ;;  %s3122_s6 = inlined_call_operand.<no memory space> [shape: f32[1,1], index: 6, kind: input, shape index: {}]   ;;  %s3123_s2 = inlined_call_operand.vmem [shape: f32[64,1], index: 2, kind: input, shape index: {}]   ;;  %s3124_s4 = inlined_call_operand.vmem [shape: f32[64,1], index: 4, kind: input, shape index: {}]   ;;  %s3125_s5 = inlined_call_operand.vmem [shape: f32[64,1], index: 5, kind: input, shape index: {}]   ;;  %s3126_s3 = inlined_call_operand.vmem [shape: f32[64,64], index: 3, kind: input, shape index: {}]   ;;  %s3127_s7 = inlined_call_operand.vmem [shape: f32[1,1,128], index: 7, kind: output, shape index: {}]  }
   0x1   :  { %v69_v0 = vld [vmem:[%s3120_s0] sm:$0xff]  ;;  %v70_v1 = vld [vmem:[%s3120_s0 + $0x8] sm:$0xff]  ;;  %2536 = vset.pattern.permute.xlu0 %v2570_v3  ;;  %2537 = vset.pattern.permute.xlu1 %v2570_v3  ;;  %v12_v4 = vstv %s3122_s6  ;;  %v30_v9 = vld [vmem:[%s3121_s1 + $0x10] sm:$0xff] }
   0x2   :  { %v28_v2 = vld [vmem:[%s3121_s1] sm:$0xff]  ;;  %v137_v5 = vand.u32 4294901760, %v69_v0  ;;  %v140_v6 = vand.u32 4294901760, %v70_v1  ;;  %v29_v8 = vld [vmem:[%s3121_s1 + $0x8] sm:$0xff]  ;;  %v31_v10 = vld [vmem:[%s3121_s1 + $0x18] sm:$0xff]  ;;  %v119_v13 = vsel %vm111_vm0, %v30_v9, 0 }
   0x3   :  { %v113_v7 = vsel %vm111_vm0, %v28_v2, 0  ;;  %13 = vst [vmem:[#allocation2] sm:$0x1] %v12_v4  ;;  %v116_v12 = vsel %vm111_vm0, %v29_v8, 0  ;;  %v122_v14 = vsel %vm111_vm0, %v31_v10, 0  ;;  %v32_v15 = vld [vmem:[%s3121_s1 + $0x20] sm:$0xff] }
   0x4   :  { %v2633_v11 = vand.u32 4294901760, %v113_v7  ;;  %v2641_v16 = vpack.c.bf16 %v140_v6, %v137_v5  ;;  %v2643_v17 = vand.u32 4294901760, %v116_v12  ;;  %v2645_v18 = vsub.f32 %v69_v0, %v137_v5  ;;  %v33_v20 = vld [vmem:[%s3121_s1 + $0x28] sm:$0xff]  ;;  %v44_v21 = vld [vmem:[%s3123_s2] sm:$0xff]  ;;  %v46_v26 = vld [vmem:[%s3123_s2 + $0x10] sm:$0xff] }
   0x5   :  { %v2647_v19 = vsub.f32 %v70_v1, %v140_v6  ;;  %v2658_v23 = vand.u32 4294901760, %v119_v13  ;;  %v2660_v24 = vand.u32 4294901760, %v122_v14  ;;  %v125_v25 = vsel %vm111_vm0, %v32_v15, 0  ;;  %73 = vperm.xlu0 %2536, %v44_v21   ;;  %v45_v31 = vld [vmem:[%s3123_s2 + $0x8] sm:$0xff]  ;;  %83 = vperm.xlu1 %2537, %v46_v26   ;;  %v47_v36 = vld [vmem:[%s3123_s2 + $0x18] sm:$0xff]  ;;  %v34_v45 = vld [vmem:[%s3121_s1 + $0x30] sm:$0xff] }
   0x6   :  { %v2656_v22 = vsub.f32 %v113_v7, %v2633_v11  ;;  %2312 = vmatprep.subr.bf16.mxu0 %v2641_v16  ;;  %v2668_v27 = vsub.f32 %v116_v12, %v2643_v17  ;;  %v286_v28 = vand.u32 4294901760, %v2645_v18  ;;  %v2672_v30 = vand.u32 4294901760, %v125_v25  ;;  %v48_v50 = vld [vmem:[%s3123_s2 + $0x20] sm:$0xff]  ;;  %v35_v55 = vld [vmem:[%s3121_s1 + $0x38] sm:$0xff]  ;;  %v49_v63 = vld [vmem:[%s3123_s2 + $0x28] sm:$0xff] }
   0x7   :  { %v293_v29 = vand.u32 4294901760, %v2647_v19  ;;  %2314 = vmatpush3.bf16.msra.mxu0 %v2641_v16  ;;  %v2680_v33 = vsub.f32 %v119_v13, %v2658_v23  ;;  %v2683_v34 = vsub.f32 %v122_v14, %v2660_v24  ;;  %v128_v35 = vsel %vm111_vm0, %v33_v20, 0  ;;  %v50_v3 = vld [vmem:[%s3123_s2 + $0x30] sm:$0xff]  ;;  %v51_v10 = vld [vmem:[%s3123_s2 + $0x38] sm:$0xff]  ;;  %v52_v13 = vld [vmem:[%s3124_s4] sm:$0xff] }
   0x8   :  { %v205_v32 = vand.u32 4294901760, %v2656_v22  ;;  %v215_v37 = vand.u32 4294901760, %v2668_v27  ;;  %v287_v38 = vsub.f32 %v2645_v18, %v286_v28  ;;  %v2697_v40 = vsub.f32 %v125_v25, %v2672_v30  ;;  %v53_v25 = vld [vmem:[%s3124_s4 + $0x8] sm:$0xff]  ;;  %v54_v26 = vld [vmem:[%s3124_s4 + $0x10] sm:$0xff] }
   0x9   :  { %v294_v39 = vsub.f32 %v2647_v19, %v293_v29  ;;  %v225_v42 = vand.u32 4294901760, %v2680_v33  ;;  %v235_v43 = vand.u32 4294901760, %v2683_v34  ;;  %v2704_v44 = vand.u32 4294901760, %v128_v35  ;;  %78 = vperm.xlu0 %2536, %v45_v31   ;;  %88 = vperm.xlu1 %2537, %v47_v36   ;;  %v56_v36 = vld [vmem:[%s3124_s4 + $0x20] sm:$0xff] }
   0xa   :  { %v206_v41 = vsub.f32 %v2656_v22, %v205_v32  ;;  %v216_v46 = vsub.f32 %v2668_v27, %v215_v37  ;;  %v288_v47 = vand.u32 4294901760, %v287_v38  ;;  %v245_v49 = vand.u32 4294901760, %v2697_v40  ;;  %v57_v38 = vld [vmem:[%s3124_s4 + $0x28] sm:$0xff] }
   0xb   :  { %v295_v48 = vand.u32 4294901760, %v294_v39  ;;  %v226_v52 = vsub.f32 %v2680_v33, %v225_v42  ;;  %v236_v53 = vsub.f32 %v2683_v34, %v235_v43  ;;  %v2723_v54 = vsub.f32 %v128_v35, %v2704_v44  ;;  %v55_v35 = vld [vmem:[%s3124_s4 + $0x18] sm:$0xff]  ;;  %v58_v39 = vld [vmem:[%s3124_s4 + $0x30] sm:$0xff] }
   0xc   :  { %v207_v51 = vand.u32 4294901760, %v206_v41  ;;  %v217_v56 = vand.u32 4294901760, %v216_v46  ;;  %v246_v58 = vsub.f32 %v2697_v40, %v245_v49  ;;  %v131_v59 = vsel %vm111_vm0, %v34_v45, 0  ;;  %v59_v41 = vld [vmem:[%s3124_s4 + $0x38] sm:$0xff]  ;;  %v60_v45 = vld [vmem:[%s3125_s5] sm:$0xff]  ;;  %v61_v46 = vld [vmem:[%s3125_s5 + $0x8] sm:$0xff] }
   0xd   :  { %v2315_v57 = vpack.c.bf16 %v295_v48, %v288_v47  ;;  %v227_v60 = vand.u32 4294901760, %v226_v52  ;;  %v255_v61 = vand.u32 4294901760, %v2723_v54  ;;  %v2733_v62 = vand.u32 4294901760, %v131_v59  ;;  %93 = vperm.xlu0 %2536, %v48_v50   ;;  %98 = vperm.xlu1 %2537, %v49_v63   ;;  %v62_v47 = vld [vmem:[%s3125_s5 + $0x10] sm:$0xff]  ;;  %v63_v48 = vld [vmem:[%s3125_s5 + $0x18] sm:$0xff]  ;;  %v64_v50 = vld [vmem:[%s3125_s5 + $0x20] sm:$0xff] }
   0xe   :  { %2051 = vmatprep.mubr.f32.mxu0 %v207_v51  ;;  %v237_v0 = vand.u32 4294901760, %v236_v53  ;;  %v134_v1 = vsel %vm111_vm0, %v35_v55, 0  ;;  %v2319_v2 = vpack.c.bf16 %v2647_v19, %v2645_v18  ;;  %v247_v4 = vand.u32 4294901760, %v246_v58  ;;  %v65_v52 = vld [vmem:[%s3125_s5 + $0x28] sm:$0xff]  ;;  %v66_v53 = vld [vmem:[%s3125_s5 + $0x30] sm:$0xff]  ;;  %v67_v18 = vld [vmem:[%s3125_s5 + $0x38] sm:$0xff] }
   0xf   :  { %2052 = vmatmul.mubr.f32.vlgmr.msra.gmra.mrb[0].mxu0 %v217_v56  ;;  %2316 = vmatprep.subr.bf16.mxu0 %v2315_v57  ;;  %v256_v5 = vsub.f32 %v2723_v54, %v255_v61  ;;  %v2748_v6 = vsub.f32 %v131_v59, %v2733_v62  ;;  %v2750_v7 = vand.u32 4294901760, %v134_v1  ;;  %v2327_v51 = vpack.c.bf16 %v293_v29, %v286_v28  ;;  %v68_v19 = vld [vmem:[#allocation2] sm:$0x1]  ;;  %v39_v29 = vld [vmem:[%s3126_s3 + $0x18] sm:$0xff] }
  0x10   :  { %2318 = vmatpush3.bf16.msra.mxu0 %v2315_v57  ;;  %2054 = vmatprep.mubr.f32.mxu0 %v227_v60 }
  0x11   :  { %2320 = vmatprep.subr.bf16.mxu0 %v2319_v2  ;;  %v265_v8 = vand.u32 4294901760, %v2748_v6  ;;  %v2754_v9 = vsub.f32 %v134_v1, %v2750_v7  ;;  %103 = vperm.xlu0 %2536, %v50_v3   ;;  %v257_v12 = vand.u32 4294901760, %v256_v5 }
  0x12   :  { %108 = vperm.xlu1 %2537, %v51_v10  }
  0x13   :  { %2055 = vmatmul.mubr.f32.gmra.mrb[2].mxu0 %v237_v0  ;;  %v266_v14 = vsub.f32 %v2748_v6, %v265_v8  ;;  %v275_v15 = vand.u32 4294901760, %v2754_v9 }
  0x14   :  { %2057 = vmatprep.mubr.f32.mxu0 %v247_v4 }
  0x15   :  { %v267_v20 = vand.u32 4294901760, %v266_v14  ;;  %v276_v21 = vsub.f32 %v2754_v9, %v275_v15  ;;  %906 = vperm.xlu0 %2536, %v52_v13  }
  0x16   :  { %911 = vperm.xlu1 %2537, %v53_v25  }
  0x17   :  { %2058 = vmatmul.mubr.f32.gmra.mrb[4].mxu0 %v257_v12  ;;  %v277_v31 = vand.u32 4294901760, %v276_v21 }
  0x18   :  { %2060 = vmatprep.mubr.f32.mxu0 %v267_v20 }
  0x19   :  { %916 = vperm.xlu0 %2536, %v54_v26  }
  0x1a   :  { %921 = vperm.xlu1 %2537, %v55_v35  }
  0x1b   :  { %2061 = vmatmul.mubr.f32.gmra.mrb[6].mxu0 %v277_v31 }
  0x1c   :  { %2067 = vmatprep.mubr.f32.mxu0 %v2633_v11 }
  0x1d   :  { %926 = vperm.xlu0 %2536, %v56_v36  }
  0x1e   :  { %931 = vperm.xlu1 %2537, %v57_v38  }
  0x1f   :  { %2068 = vmatmul.mubr.f32.vlgmr.msra.gmra.mrb[0].mxu0 %v2643_v17 }
  0x20   :  { %2322 = vmatpush3.bf16.msra.mxu0 %v2319_v2  ;;  %2070 = vmatprep.mubr.f32.mxu0 %v2658_v23 }
  0x21   :  { %2324 = vmatprep.subr.bf16.mxu0 %v2641_v16  ;;  %936 = vperm.xlu0 %2536, %v58_v39  }
  0x22   :  { %941 = vperm.xlu1 %2537, %v59_v41  }
  0x23   :  { %2071 = vmatmul.mubr.f32.gmra.mrb[2].mxu0 %v2660_v24 }
  0x24   :  { %2073 = vmatprep.mubr.f32.mxu0 %v2672_v30 }
  0x25   :  { %1817 = vperm.xlu0 %2536, %v60_v45  }
  0x26   :  { %1822 = vperm.xlu1 %2537, %v61_v46  }
  0x27   :  { %2074 = vmatmul.mubr.f32.gmra.mrb[4].mxu0 %v2704_v44 }
  0x28   :  { %2076 = vmatprep.mubr.f32.mxu0 %v2733_v62 }
  0x29   :  { %1827 = vperm.xlu0 %2536, %v62_v47  }
  0x2a   :  { %1832 = vperm.xlu1 %2537, %v63_v48  }
  0x2b   :  { %2077 = vmatmul.mubr.f32.gmra.mrb[6].mxu0 %v2750_v7 }
  0x2c   :  { %2083 = vmatprep.mubr.f32.mxu0 %v2656_v22 }
  0x2d   :  { %1837 = vperm.xlu0 %2536, %v64_v50  }
  0x2e   :  { %1842 = vperm.xlu1 %2537, %v65_v52  }
  0x2f   :  { %2084 = vmatmul.mubr.f32.vlgmr.msra.gmra.mrb[0].mxu0 %v2668_v27  ;;  %v38_v27 = vld [vmem:[%s3126_s3 + $0x10] sm:$0xff] }
  0x30   :  { %2326 = vmatpush3.bf16.msra.mxu0 %v2641_v16  ;;  %2086 = vmatprep.mubr.f32.mxu0 %v2680_v33  ;;  %v952_v28 = vsel %vm944_vm1, %v38_v27, 0 }
  0x31   :  { %2328 = vmatprep.subr.bf16.mxu0 %v2327_v51  ;;  %1847 = vperm.xlu0 %2536, %v66_v53  }
  0x32   :  { %1852 = vperm.xlu1 %2537, %v67_v18  }
  0x33   :  { %2087 = vmatmul.mubr.f32.gmra.mrb[2].mxu0 %v2683_v34  ;;  %v40_v34 = vld [vmem:[%s3126_s3 + $0x20] sm:$0xff] }
  0x34   :  { %2089 = vmatprep.mubr.f32.mxu0 %v2697_v40  ;;  %v41_v40 = vld [vmem:[%s3126_s3 + $0x28] sm:$0xff] }
  0x35   :  { %1878 = vperm.xlu0 %2536, %v68_v19  }
  0x37   :  { %2090 = vmatmul.mubr.f32.gmra.mrb[4].mxu0 %v2723_v54  ;;  %v43_v54 = vld [vmem:[%s3126_s3 + $0x38] sm:$0xff] }
  0x38   :  { %2092 = vmatprep.mubr.f32.mxu0 %v2748_v6  ;;  %v2918_v55 = vsel %vm944_vm1, %v43_v54, 0  ;;  %v2922_v6 = vand.u32 4294901760, %v952_v28 }
  0x3b   :  { %2093 = vmatmul.mubr.f32.gmra.mrb[6].mxu0 %v2754_v9 }
  0x3c   :  { %2099 = vmatprep.mubr.f32.mxu0 %v205_v32  ;;  %v955_v32 = vsel %vm944_vm1, %v39_v29, 0 }
  0x3d   :  { %v2927_v10 = vand.u32 4294901760, %v955_v32 }
  0x3f   :  { %2100 = vmatmul.mubr.f32.vlgmr.msra.gmra.mrb[0].mxu0 %v215_v37  ;;  %v2900_v37 = vsel %vm944_vm1, %v40_v34, 0  ;;  %v2934_v26 = vsub.f32 %v955_v32, %v2927_v10 }
  0x40   :  { %2330 = vmatpush3.bf16.msra.mxu0 %v2327_v51  ;;  %2102 = vmatprep.mubr.f32.mxu0 %v225_v42  ;;  %v2938_v48 = vand.u32 4294901760, %v2900_v37 }
  0x41   :  { %2332 = vmatprep.subr.bf16.mxu0 %v2641_v16  ;;  %v1074_v52 = vand.u32 4294901760, %v2934_v26 }
  0x42   :  { %v2960_v32 = vsub.f32 %v2900_v37, %v2938_v48 }
  0x43   :  { %2103 = vmatmul.mubr.f32.gmra.mrb[2].mxu0 %v235_v43  ;;  %v2906_v43 = vsel %vm944_vm1, %v41_v40, 0 }
  0x44   :  { %2105 = vmatprep.mubr.f32.mxu0 %v245_v49  ;;  %v2954_v27 = vand.u32 4294901760, %v2906_v43 }
  0x47   :  { %2106 = vmatmul.mubr.f32.gmra.mrb[4].mxu0 %v255_v61 }
  0x48   :  { %2108 = vmatprep.mubr.f32.mxu0 %v265_v8 }
  0x4b   :  { %2109 = vmatmul.mubr.f32.gmra.mrb[6].mxu0 %v275_v15  ;;  %v2930_v15 = vsub.f32 %v952_v28, %v2922_v6 }
  0x4c   :  { %2115 = vmatprep.mubr.f32.mxu0 %v2633_v11 }
  0x4d   :  { %v1064_v46 = vand.u32 4294901760, %v2930_v15 }
  0x4f   :  { %2116 = vmatmul.mubr.f32.vlgmr.msra.gmra.mrb[0].mxu0 %v2643_v17 }
  0x50   :  { %2334 = vmatpush3.bf16.msra.mxu0 %v2641_v16  ;;  %2118 = vmatprep.mubr.f32.mxu0 %v2658_v23  ;;  %v36_v16 = vld [vmem:[%s3126_s3] sm:$0xff] }
  0x53   :  { %2119 = vmatmul.mubr.f32.gmra.mrb[2].mxu0 %v2660_v24 }
  0x54   :  { %2121 = vmatprep.mubr.f32.mxu0 %v2672_v30 }
  0x57   :  { %2122 = vmatmul.mubr.f32.gmra.mrb[4].mxu0 %v2704_v44 }
  0x58   :  { %2124 = vmatprep.mubr.f32.mxu0 %v2733_v62 }
  0x5b   :  { %2125 = vmatmul.mubr.f32.gmra.mrb[6].mxu0 %v2750_v7 }
  0x5c   :  { %2131 = vmatprep.mubr.f32.mxu0 %v2633_v11  ;;  %v946_v11 = vsel %vm944_vm1, %v36_v16, 0 }
  0x5d   :  { %v2877_v22 = vand.u32 4294901760, %v946_v11 }
  0x5f   :  { %2132 = vmatmul.mubr.f32.vlgmr.msra.gmra.mrb[0].mxu0 %v2643_v17  ;;  %v37_v17 = vld [vmem:[%s3126_s3 + $0x8] sm:$0xff] }
  0x60   :  { %2134 = vmatprep.mubr.f32.mxu0 %v2658_v23  ;;  %v949_v23 = vsel %vm944_vm1, %v37_v17, 0 }
  0x61   :  { %v2920_v1 = vand.u32 4294901760, %v949_v23 }
  0x63   :  { %2135 = vmatmul.mubr.f32.gmra.mrb[2].mxu0 %v2660_v24  ;;  %v2881_v24 = vsub.f32 %v946_v11, %v2877_v22  ;;  %v2925_v9 = vsub.f32 %v949_v23, %v2920_v1  ;;  %v2951_v23 = vsub.f32 %v2930_v15, %v1064_v46 }
  0x64   :  { %2137 = vmatprep.mubr.f32.mxu0 %v2672_v30 }
  0x65   :  { %v1044_v30 = vand.u32 4294901760, %v2881_v24  ;;  %v1054_v25 = vand.u32 4294901760, %v2925_v9 }
  0x67   :  { %2138 = vmatmul.mubr.f32.gmra.mrb[4].mxu0 %v2704_v44  ;;  %v1045_v33 = vsub.f32 %v2881_v24, %v1044_v30  ;;  %v42_v44 = vld [vmem:[%s3126_s3 + $0x30] sm:$0xff]  ;;  %v2943_v51 = vsub.f32 %v2925_v9, %v1054_v25 }
  0x68   :  { %2140 = vmatprep.mubr.f32.mxu0 %v2733_v62  ;;  %v2912_v49 = vsel %vm944_vm1, %v42_v44, 0  ;;  %v2970_v44 = vsub.f32 %v2934_v26, %v1074_v52 }
  0x69   :  { %v1046_v42 = vand.u32 4294901760, %v1045_v33  ;;  %v1056_v40 = vand.u32 4294901760, %v2943_v51 }
  0x6b   :  { %2141 = vmatmul.mubr.f32.gmra.mrb[6].mxu0 %v2750_v7  ;;  %2159 = vmatprep.mubr.f32.mxu1 %v1046_v42 }
  0x6c   :  { %2299 = vmatprep.mubr.f32.mxu0 %v2877_v22 }
  0x84   :  { %v74_v56 = vpop.permute.xlu0 %73  ;;  %v84_v57 = vpop.permute.xlu1 %83 }
  0x88   :  { %v79_v58 = vpop.permute.xlu0 %78  ;;  %v89_v59 = vpop.permute.xlu1 %88 }
  0x8c   :  { %v99_v4 = vpop.permute.xlu1 %98  ;;  %v94_v7 = vpop.permute.xlu0 %93 }
  0x90   :  { %v104_v35 = vpop.permute.xlu0 %103 }
  0x91   :  { %v109_v20 = vpop.permute.xlu1 %108 }
 0x132   :  { %v2133_v60 = vpop.f32.mrb[0].mxu0 }
 0x133   :  { %v2439_v61 = vadd.f32 %v2133_v60, %v79_v58  ;;  %v850_v62 = vpop.f32.mrb[1].mxu0 }
 0x134   :  { %v2440_v63 = vadd.f32 %v850_v62, %v74_v56 }
 0x135   :  { %2538 = vtanh.f32 %v2439_v61 }
 0x136   :  { %2540 = vtanh.f32 %v2440_v63  ;;  %v2136_v0 = vpop.f32.mrb[2].mxu0  ;;  %v2978_v63 = vsub.f32 %v2906_v43, %v2954_v27  ;;  %v2990_v43 = vand.u32 4294901760, %v2918_v55 }
 0x137   :  { %v2441_v2 = vadd.f32 %v2136_v0, %v89_v59  ;;  %v862_v3 = vpop.f32.mrb[3].mxu0 }
 0x138   :  { %v2442_v5 = vadd.f32 %v862_v3, %v84_v57 }
 0x139   :  { %2542 = vtanh.f32 %v2441_v2 }
 0x13a   :  { %2544 = vtanh.f32 %v2442_v5  ;;  %v2139_v8 = vpop.f32.mrb[4].mxu0 }
 0x13b   :  { %v2443_v12 = vadd.f32 %v2139_v8, %v99_v4  ;;  %v874_v13 = vpop.f32.mrb[5].mxu0  ;;  %v2987_v8 = vand.u32 4294901760, %v2912_v49 }
 0x13c   :  { %v2444_v14 = vadd.f32 %v874_v13, %v94_v7 }
 0x13d   :  { %2546 = vtanh.f32 %v2443_v12 }
 0x13e   :  { %2548 = vtanh.f32 %v2444_v14  ;;  %v2142_v21 = vpop.f32.mrb[6].mxu0 }
 0x13f   :  { %v2539_v31 = vpop.eup %2538  ;;  %v2445_v36 = vadd.f32 %v2142_v21, %v109_v20  ;;  %v886_v38 = vpop.f32.mrb[7].mxu0 }
 0x140   :  { %v2541_v39 = vpop.eup %2540  ;;  %v973_v41 = vand.u32 4294901760, %v2539_v31  ;;  %v2446_v45 = vadd.f32 %v886_v38, %v104_v35 }
 0x141   :  { %v970_v47 = vand.u32 4294901760, %v2541_v39  ;;  %2550 = vtanh.f32 %v2445_v36 }
 0x142   :  { %2552 = vtanh.f32 %v2446_v45  ;;  %v1131_v50 = vsub.f32 %v2539_v31, %v973_v41 }
 0x143   :  { %v2543_v53 = vpop.eup %2542  ;;  %v2946_v18 = vpack.c.bf16 %v973_v41, %v970_v47  ;;  %v1124_v19 = vsub.f32 %v2541_v39, %v970_v47 }
 0x144   :  { %v2545_v16 = vpop.eup %2544  ;;  %v979_v11 = vand.u32 4294901760, %v2543_v53  ;;  %v1132_v17 = vand.u32 4294901760, %v1131_v50 }
 0x145   :  { %v976_v28 = vand.u32 4294901760, %v2545_v16  ;;  %2336 = vmatprep.subr.bf16.mxu1 %v2946_v18  ;;  %2416 = vmatprep.subr.bf16.mxu0 %v2946_v18  ;;  %v1125_v29 = vand.u32 4294901760, %v1124_v19  ;;  %v2962_v33 = vpack.c.bf16 %v1131_v50, %v1124_v19 }
 0x146   :  { %2338 = vmatpush3.bf16.msra.mxu1 %v2946_v18  ;;  %2418 = vmatpush3.bf16.msra.mxu0 %v2946_v18  ;;  %v1133_v34 = vsub.f32 %v1131_v50, %v1132_v17  ;;  %v1145_v42 = vsub.f32 %v2543_v53, %v979_v11 }
 0x147   :  { %v2547_v54 = vpop.eup %2546  ;;  %v2972_v56 = vpack.c.bf16 %v979_v11, %v976_v28  ;;  %v1126_v37 = vsub.f32 %v1124_v19, %v1125_v29  ;;  %v1138_v57 = vsub.f32 %v2545_v16, %v976_v28  ;;  %v2974_v58 = vpack.c.bf16 %v1132_v17, %v1125_v29 }
 0x148   :  { %v2549_v59 = vpop.eup %2548  ;;  %v985_v60 = vand.u32 4294901760, %v2547_v54  ;;  %v1134_v61 = vand.u32 4294901760, %v1133_v34  ;;  %v1146_v62 = vand.u32 4294901760, %v1145_v42  ;;  %v1084_v19 = vand.u32 4294901760, %v2960_v32 }
 0x149   :  { %v982_v0 = vand.u32 4294901760, %v2549_v59  ;;  %2340 = vmatprep.subr.bf16.mxu1 %v2972_v56  ;;  %2420 = vmatprep.subr.bf16.mxu0 %v2972_v56  ;;  %v1127_v2 = vand.u32 4294901760, %v1126_v37  ;;  %v1139_v3 = vand.u32 4294901760, %v1138_v57  ;;  %v2982_v4 = vpack.c.bf16 %v1145_v42, %v1138_v57 }
 0x14a   :  { %2342 = vmatpush3.bf16.msra.mxu1 %v2972_v56  ;;  %2422 = vmatpush3.bf16.msra.mxu0 %v2972_v56  ;;  %v1147_v5 = vsub.f32 %v1145_v42, %v1146_v62  ;;  %v1159_v7 = vsub.f32 %v2547_v54, %v985_v60  ;;  %v3005_v11 = vsub.f32 %v2912_v49, %v2987_v8  ;;  %v1094_v54 = vand.u32 4294901760, %v2978_v63 }
 0x14b   :  { %v2551_v12 = vpop.eup %2550  ;;  %v2992_v13 = vpack.c.bf16 %v985_v60, %v982_v0  ;;  %v2351_v14 = vpack.c.bf16 %v1134_v61, %v1127_v2  ;;  %v1140_v20 = vsub.f32 %v1138_v57, %v1139_v3  ;;  %v1152_v21 = vsub.f32 %v2549_v59, %v982_v0 }
 0x14c   :  { %v2553_v31 = vpop.eup %2552  ;;  %v991_v35 = vand.u32 4294901760, %v2551_v12  ;;  %v1148_v36 = vand.u32 4294901760, %v1147_v5  ;;  %v1160_v38 = vand.u32 4294901760, %v1159_v7  ;;  %v2994_v39 = vpack.c.bf16 %v1146_v62, %v1139_v3 }
 0x14d   :  { %v988_v41 = vand.u32 4294901760, %v2553_v31  ;;  %2344 = vmatprep.subr.bf16.mxu1 %v2992_v13  ;;  %2424 = vmatprep.subr.bf16.mxu0 %v2992_v13  ;;  %v1141_v45 = vand.u32 4294901760, %v1140_v20  ;;  %v1153_v47 = vand.u32 4294901760, %v1152_v21  ;;  %v2998_v50 = vpack.c.bf16 %v1159_v7, %v1152_v21 }
 0x14e   :  { %2346 = vmatpush3.bf16.msra.mxu1 %v2992_v13  ;;  %2426 = vmatpush3.bf16.msra.mxu0 %v2992_v13  ;;  %v1161_v53 = vsub.f32 %v1159_v7, %v1160_v38  ;;  %v1173_v16 = vsub.f32 %v2551_v12, %v991_v35  ;;  %v3016_v49 = vsub.f32 %v2918_v55, %v2990_v43  ;;  %v1066_v62 = vand.u32 4294901760, %v2951_v23 }
 0x14f   :  { %v3007_v17 = vpack.c.bf16 %v991_v35, %v988_v41  ;;  %v2355_v28 = vpack.c.bf16 %v1148_v36, %v1141_v45  ;;  %v1154_v29 = vsub.f32 %v1152_v21, %v1153_v47  ;;  %v1166_v34 = vsub.f32 %v2553_v31, %v988_v41 }
 0x150   :  { %v1162_v42 = vand.u32 4294901760, %v1161_v53  ;;  %v1174_v37 = vand.u32 4294901760, %v1173_v16  ;;  %v3010_v57 = vpack.c.bf16 %v1160_v38, %v1153_v47  ;;  %v1085_v0 = vsub.f32 %v2960_v32, %v1084_v19 }
 0x151   :  { %2348 = vmatprep.subr.bf16.mxu1 %v3007_v17  ;;  %2428 = vmatprep.subr.bf16.mxu0 %v3007_v17  ;;  %v1155_v59 = vand.u32 4294901760, %v1154_v29  ;;  %v1167_v60 = vand.u32 4294901760, %v1166_v34  ;;  %v2379_v61 = vpack.c.bf16 %v1173_v16, %v1166_v34  ;;  %v1104_v3 = vand.u32 4294901760, %v3005_v11 }
 0x152   :  { %2350 = vmatpush3.bf16.msra.mxu1 %v3007_v17  ;;  %2430 = vmatpush3.bf16.msra.mxu0 %v3007_v17  ;;  %v1175_v2 = vsub.f32 %v1173_v16, %v1174_v37  ;;  %v1076_v20 = vand.u32 4294901760, %v2970_v44  ;;  %v1095_v23 = vsub.f32 %v2978_v63, %v1094_v54  ;;  %v1114_v31 = vand.u32 4294901760, %v3016_v49 }
 0x153   :  { %2352 = vmatprep.subr.bf16.mxu1 %v2351_v14  ;;  %v2359_v5 = vpack.c.bf16 %v1162_v42, %v1155_v59  ;;  %v1168_v7 = vsub.f32 %v1166_v34, %v1167_v60  ;;  %v3025_v12 = vpack.c.bf16 %v1174_v37, %v1167_v60  ;;  %v1086_v35 = vand.u32 4294901760, %v1085_v0 }
 0x154   :  { %v1176_v55 = vand.u32 4294901760, %v1175_v2  ;;  %v1105_v36 = vsub.f32 %v3005_v11, %v1104_v3  ;;  %v1115_v44 = vsub.f32 %v3016_v49, %v1114_v31 }
 0x155   :  { %2160 = vmatmul.mubr.f32.vlgmr.msra.gmra.mrb[0].mxu1 %v1056_v40  ;;  %v1169_v21 = vand.u32 4294901760, %v1168_v7  ;;  %2300 = vmatmul.mubr.f32.vlgmr.msra.gmra.mrb[8].mxu0 %v2920_v1  ;;  %v1096_v40 = vand.u32 4294901760, %v1095_v23 }
 0x156   :  { %2354 = vmatpush3.bf16.msra.mxu1 %v2351_v14  ;;  %2162 = vmatprep.mubr.f32.mxu1 %v1066_v62  ;;  %v1106_v38 = vand.u32 4294901760, %v1105_v36  ;;  %v1116_v14 = vand.u32 4294901760, %v1115_v44  ;;  %v1881_v36 = vlaneseq }
 0x157   :  { %2356 = vmatprep.subr.bf16.mxu1 %v2355_v28  ;;  %v2363_v51 = vpack.c.bf16 %v1176_v55, %v1169_v21 }
 0x158   :  { %v1882_v44 = vshrl.u32 %v1881_v36, 7 }
 0x159   :  { %2163 = vmatmul.mubr.f32.gmra.mrb[2].mxu1 %v1076_v20 }
 0x15a   :  { %2358 = vmatpush3.bf16.msra.mxu1 %v2355_v28  ;;  %2165 = vmatprep.mubr.f32.mxu1 %v1086_v35 }
 0x15b   :  { %2360 = vmatprep.subr.bf16.mxu1 %v2359_v5 }
 0x15d   :  { %2166 = vmatmul.mubr.f32.gmra.mrb[4].mxu1 %v1096_v40 }
 0x15e   :  { %2362 = vmatpush3.bf16.msra.mxu1 %v2359_v5  ;;  %2168 = vmatprep.mubr.f32.mxu1 %v1106_v38 }
 0x15f   :  { %2364 = vmatprep.subr.bf16.mxu1 %v2363_v51 }
 0x161   :  { %2169 = vmatmul.mubr.f32.gmra.mrb[6].mxu1 %v1116_v14 }
 0x162   :  { %2366 = vmatpush3.bf16.msra.mxu1 %v2363_v51  ;;  %2187 = vmatprep.mubr.f32.mxu1 %v2877_v22 }
 0x163   :  { %2368 = vmatprep.subr.bf16.mxu1 %v2962_v33 }
 0x165   :  { %2188 = vmatmul.mubr.f32.vlgmr.msra.gmra.mrb[0].mxu1 %v2920_v1 }
 0x166   :  { %2370 = vmatpush3.bf16.msra.mxu1 %v2962_v33  ;;  %2190 = vmatprep.mubr.f32.mxu1 %v2922_v6 }
 0x167   :  { %2372 = vmatprep.subr.bf16.mxu1 %v2982_v4 }
 0x169   :  { %2191 = vmatmul.mubr.f32.gmra.mrb[2].mxu1 %v2927_v10 }
 0x16a   :  { %2374 = vmatpush3.bf16.msra.mxu1 %v2982_v4  ;;  %2193 = vmatprep.mubr.f32.mxu1 %v2938_v48 }
 0x16b   :  { %2376 = vmatprep.subr.bf16.mxu1 %v2998_v50 }
 0x16d   :  { %2194 = vmatmul.mubr.f32.gmra.mrb[4].mxu1 %v2954_v27 }
 0x16e   :  { %2378 = vmatpush3.bf16.msra.mxu1 %v2998_v50  ;;  %2196 = vmatprep.mubr.f32.mxu1 %v2987_v8 }
 0x16f   :  { %2380 = vmatprep.subr.bf16.mxu1 %v2379_v61 }
 0x171   :  { %2197 = vmatmul.mubr.f32.gmra.mrb[6].mxu1 %v2990_v43 }
 0x172   :  { %2382 = vmatpush3.bf16.msra.mxu1 %v2379_v61  ;;  %2215 = vmatprep.mubr.f32.mxu1 %v2881_v24 }
 0x173   :  { %2384 = vmatprep.subr.bf16.mxu1 %v2946_v18 }
 0x175   :  { %2216 = vmatmul.mubr.f32.vlgmr.msra.gmra.mrb[0].mxu1 %v2925_v9 }
 0x176   :  { %2386 = vmatpush3.bf16.msra.mxu1 %v2946_v18  ;;  %2218 = vmatprep.mubr.f32.mxu1 %v2930_v15 }
 0x177   :  { %2388 = vmatprep.subr.bf16.mxu1 %v2972_v56 }
 0x179   :  { %2219 = vmatmul.mubr.f32.gmra.mrb[2].mxu1 %v2934_v26 }
 0x17a   :  { %2390 = vmatpush3.bf16.msra.mxu1 %v2972_v56  ;;  %2221 = vmatprep.mubr.f32.mxu1 %v2960_v32 }
 0x17b   :  { %2392 = vmatprep.subr.bf16.mxu1 %v2992_v13 }
 0x17d   :  { %2222 = vmatmul.mubr.f32.gmra.mrb[4].mxu1 %v2978_v63 }
 0x17e   :  { %2394 = vmatpush3.bf16.msra.mxu1 %v2992_v13  ;;  %2224 = vmatprep.mubr.f32.mxu1 %v3005_v11 }
 0x17f   :  { %2396 = vmatprep.subr.bf16.mxu1 %v3007_v17 }
 0x181   :  { %2225 = vmatmul.mubr.f32.gmra.mrb[6].mxu1 %v3016_v49 }
 0x182   :  { %2398 = vmatpush3.bf16.msra.mxu1 %v3007_v17  ;;  %2243 = vmatprep.mubr.f32.mxu1 %v1044_v30  ;;  %v912_v30 = vpop.permute.xlu1 %911 }
 0x183   :  { %2400 = vmatprep.subr.bf16.mxu1 %v2974_v58 }
 0x185   :  { %2244 = vmatmul.mubr.f32.vlgmr.msra.gmra.mrb[0].mxu1 %v1054_v25 }
 0x186   :  { %2402 = vmatpush3.bf16.msra.mxu1 %v2974_v58  ;;  %2246 = vmatprep.mubr.f32.mxu1 %v1064_v46  ;;  %v922_v9 = vpop.permute.xlu1 %921 }
 0x187   :  { %2404 = vmatprep.subr.bf16.mxu1 %v2994_v39 }
 0x189   :  { %2247 = vmatmul.mubr.f32.gmra.mrb[2].mxu1 %v1074_v52 }
 0x18a   :  { %2406 = vmatpush3.bf16.msra.mxu1 %v2994_v39  ;;  %2249 = vmatprep.mubr.f32.mxu1 %v1084_v19  ;;  %v932_v52 = vpop.permute.xlu1 %931 }
 0x18b   :  { %2408 = vmatprep.subr.bf16.mxu1 %v3010_v57 }
 0x18d   :  { %2250 = vmatmul.mubr.f32.gmra.mrb[4].mxu1 %v1094_v54 }
 0x18e   :  { %2410 = vmatpush3.bf16.msra.mxu1 %v3010_v57  ;;  %2252 = vmatprep.mubr.f32.mxu1 %v1104_v3 }
 0x18f   :  { %2412 = vmatprep.subr.bf16.mxu1 %v3025_v12 }
 0x191   :  { %2253 = vmatmul.mubr.f32.gmra.mrb[6].mxu1 %v1114_v31 }
 0x192   :  { %2414 = vmatpush3.bf16.msra.mxu1 %v3025_v12  ;;  %2271 = vmatprep.mubr.f32.mxu1 %v2877_v22 }
 0x193   :  { %2431 = vmatprep.subr.bf16.mxu1 %v2946_v18 }
 0x195   :  { %2272 = vmatmul.mubr.f32.vlgmr.msra.gmra.mrb[0].mxu1 %v2920_v1  ;;  %v907_v1 = vpop.permute.xlu0 %906 }
 0x196   :  { %2435 = vmatpush3.bf16.msra.mxu1 %v2946_v18  ;;  %2274 = vmatprep.mubr.f32.mxu1 %v2922_v6 }
 0x197   :  { %2432 = vmatprep.subr.bf16.mxu1 %v2972_v56 }
 0x199   :  { %2275 = vmatmul.mubr.f32.gmra.mrb[2].mxu1 %v2927_v10  ;;  %v917_v15 = vpop.permute.xlu0 %916 }
 0x19a   :  { %2436 = vmatpush3.bf16.msra.mxu1 %v2972_v56  ;;  %2277 = vmatprep.mubr.f32.mxu1 %v2938_v48 }
 0x19b   :  { %2433 = vmatprep.subr.bf16.mxu1 %v2992_v13 }
 0x19d   :  { %2278 = vmatmul.mubr.f32.gmra.mrb[4].mxu1 %v2954_v27  ;;  %v927_v18 = vpop.permute.xlu0 %926 }
 0x19e   :  { %2437 = vmatpush3.bf16.msra.mxu1 %v2992_v13  ;;  %2280 = vmatprep.mubr.f32.mxu1 %v2987_v8 }
 0x19f   :  { %2434 = vmatprep.subr.bf16.mxu1 %v3007_v17 }
 0x1a1   :  { %2281 = vmatmul.mubr.f32.gmra.mrb[6].mxu1 %v2990_v43  ;;  %v937_v32 = vpop.permute.xlu0 %936 }
 0x1a2   :  { %2438 = vmatpush3.bf16.msra.mxu1 %v3007_v17  ;;  %2302 = vmatprep.mubr.f32.mxu1 %v2922_v6 }
 0x1a5   :  { %2303 = vmatmul.mubr.f32.vlgmr.msra.gmra.mrb[2].mxu1 %v2927_v10  ;;  %v1818_v63 = vpop.permute.xlu0 %1817 }
 0x1a6   :  { %2305 = vmatprep.mubr.f32.mxu1 %v2938_v48 }
 0x1a9   :  { %2306 = vmatmul.mubr.f32.gmra.mrb[4].mxu1 %v2954_v27  ;;  %v942_v27 = vpop.permute.xlu1 %941  ;;  %v1828_v28 = vpop.permute.xlu0 %1827 }
 0x1aa   :  { %2308 = vmatprep.mubr.f32.mxu1 %v2987_v8 }
 0x1ad   :  { %2309 = vmatmul.mubr.f32.gmra.mrb[6].mxu1 %v2990_v43  ;;  %v1823_v56 = vpop.permute.xlu1 %1822  ;;  %v1838_v57 = vpop.permute.xlu0 %1837 }
 0x1b1   :  { %v1833_v34 = vpop.permute.xlu1 %1832  ;;  %v1848_v55 = vpop.permute.xlu0 %1847 }
 0x1b5   :  { %v1843_v62 = vpop.permute.xlu1 %1842 }
 0x1b9   :  { %v1853_v21 = vpop.permute.xlu1 %1852 }
 0x228   :  { %v2301_v22 = vpop.f32.mrb[8].mxu0 }
 0x229   :  { %v1761_v24 = vpop.f32.mrb[9].mxu0 }
 0x268   :  { %v2273_v25 = vpop.f32.mrb[0].mxu1 }
 0x269   :  { %v2447_v26 = vadd.f32 %v2273_v25, %v912_v30  ;;  %v1640_v46 = vpop.f32.mrb[1].mxu1  ;;  %v1879_v30 = vpop.permute.xlu0 %1878 }
 0x26a   :  { %v2449_v6 = vadd.f32 %v1640_v46, %v907_v1 }
 0x26b   :  { %v2448_v10 = vadd.f32 %v2447_v26, %v2301_v22  ;;  %v1883_v22 = vsub.s32 0, %v1882_v44 }
 0x26c   :  { %v2450_v48 = vadd.f32 %v2449_v6, %v1761_v24 }
 0x26d   :  { %2554 = vtanh.f32 %v2448_v10 }
 0x26e   :  { %2556 = vtanh.f32 %v2450_v48 }
 0x277   :  { %v2555_v33 = vpop.eup %2554 }
 0x278   :  { %v2557_v58 = vpop.eup %2556  ;;  %v1856_v4 = vmul.f32 %v2555_v33, %v1823_v56  ;;  %v2304_v8 = vpop.f32.mrb[2].mxu1 }
 0x279   :  { %v1855_v43 = vmul.f32 %v2557_v58, %v1818_v63  ;;  %v2451_v13 = vadd.f32 %v2304_v8, %v922_v9  ;;  %v1773_v39 = vpop.f32.mrb[3].mxu1  ;;  %v1884_v9 = vrot.slane %v1879_v30, %v1883_v22 }
 0x27a   :  { %v2452_v41 = vadd.f32 %v1773_v39, %v917_v15 }
 0x27b   :  { %v1863_v45 = vadd.f32 %v1856_v4, %v1855_v43  ;;  %2558 = vtanh.f32 %v2451_v13 }
 0x27c   :  { %2560 = vtanh.f32 %v2452_v41  ;;  %v2307_v47 = vpop.f32.mrb[4].mxu1 }
 0x27d   :  { %v2453_v50 = vadd.f32 %v2307_v47, %v932_v52  ;;  %v1785_v53 = vpop.f32.mrb[5].mxu1 }
 0x27e   :  { %v2454_v19 = vadd.f32 %v1785_v53, %v927_v18 }
 0x27f   :  { %2562 = vtanh.f32 %v2453_v50 }
 0x280   :  { %2564 = vtanh.f32 %v2454_v19  ;;  %v2310_v16 = vpop.f32.mrb[6].mxu1 }
 0x281   :  { %v2455_v11 = vadd.f32 %v2310_v16, %v942_v27  ;;  %v1797_v17 = vpop.f32.mrb[7].mxu1 }
 0x282   :  { %v2456_v29 = vadd.f32 %v1797_v17, %v937_v32 }
 0x283   :  { %2566 = vtanh.f32 %v2455_v11 }
 0x284   :  { %2568 = vtanh.f32 %v2456_v29 }
 0x285   :  { %v2559_v42 = vpop.eup %2558 }
 0x286   :  { %v2561_v54 = vpop.eup %2560  ;;  %v1858_v60 = vmul.f32 %v2559_v42, %v1833_v34 }
 0x287   :  { %v1857_v37 = vmul.f32 %v2561_v54, %v1828_v28 }
 0x289   :  { %v2563_v59 = vpop.eup %2562  ;;  %v1864_v49 = vadd.f32 %v1863_v45, %v1857_v37 }
 0x28a   :  { %v2565_v61 = vpop.eup %2564  ;;  %v1860_v5 = vmul.f32 %v2563_v59, %v1843_v62 }
 0x28b   :  { %v1859_v0 = vmul.f32 %v2565_v61, %v1838_v57  ;;  %v1865_v2 = vadd.f32 %v1864_v49, %v1858_v60 }
 0x28d   :  { %v2567_v3 = vpop.eup %2566  ;;  %v1866_v7 = vadd.f32 %v1865_v2, %v1859_v0 }
 0x28e   :  { %v2569_v12 = vpop.eup %2568  ;;  %v1862_v31 = vmul.f32 %v2567_v3, %v1853_v21 }
 0x28f   :  { %v1861_v20 = vmul.f32 %v2569_v12, %v1848_v55  ;;  %v1867_v23 = vadd.f32 %v1866_v7, %v1860_v5 }
 0x291   :  { %v1868_v35 = vadd.f32 %v1867_v23, %v1861_v20 }
 0x293   :  { %v1869_v51 = vadd.f32 %v1868_v35, %v1862_v31 }
 0x295   :  { %v1870_v40 = vrot.slane %v1869_v51, 4 }
 0x297   :  { %v1871_v38 = vadd.f32 %v1870_v40, %v1869_v51 }
 0x299   :  { %v1872_v14 = vrot.slane %v1871_v38, 2 }
 0x29b   :  { %v1873_v24 = vadd.f32 %v1872_v14, %v1871_v38 }
 0x29d   :  { %v1874_v1 = vrot.slane %v1873_v24, 1 }
 0x29f   :  { %v1875_v15 = vadd.f32 %v1874_v1, %v1873_v24 }
 0x2a1   :  { %v1885_v25 = vadd.f32 %v1884_v9, %v1875_v15 }
 0x2a3   :  { %1886 = vst [vmem:[%s3127_s7] sm:$0x1] %v1885_v25 }

</bundles_post_ra>
